<compile_context>
chip_gen: v6e
topology: v6e:2x2x1
jax: 0.10.0
libtpu: 0.0.40
codegen_flags: <defaults>
</compile_context>

<pallas_src>
import functools

import jax
import jax.numpy as jnp
from jax.experimental import pallas as pl
from jax.experimental.pallas import tpu as pltpu

HIDDEN = 32          # fixed by the module: nn.Linear(state_dim, 32)
LANE = 128           # TPU lane width
SUBLANE = 8          # TPU sublane width
NEG_INF = -1e30      # bias for padded (fake) action rows -> exp underflows to 0


def _round_up(x, m):
    return ((x + m - 1) // m) * m


def actor_kernel(x_ref, w1_ref, b1_ref, w2_ref, b2_ref, out_ref):
    """Feature-major 2-layer MLP + softmax (batch lives in the lane dim).

    x_ref   : (S_pad, TB)   state features, batch in lanes
    w1_ref  : (32, S_pad)   fc1 weight (PyTorch (out,in) layout, S zero-padded)
    b1_ref  : (32, 1)
    w2_ref  : (A_pad, 32)   fc2 weight, A padded to 8 sublanes (zero rows)
    b2_ref  : (A_pad, 1)    padded rows carry -1e30 -> softmax weight exactly 0
    out_ref : (A_pad, TB)   probabilities, batch stays in lanes
    """
    # fc1 + ReLU: (32, TB) = (32, S_pad) @ (S_pad, TB)
    h = jnp.dot(w1_ref[...], x_ref[...], preferred_element_type=jnp.float32)
    h = jnp.maximum(h + b1_ref[...], 0.0)

    # fc2: (A_pad, TB) = (A_pad, 32) @ (32, TB)
    logits = jnp.dot(w2_ref[...], h, preferred_element_type=jnp.float32)
    logits = logits + b2_ref[...]

    # Numerically stable softmax over the (sublane) action axis.
    m = jnp.max(logits, axis=0, keepdims=True)
    e = jnp.exp(logits - m)
    denom = jnp.sum(e, axis=0, keepdims=True)
    # Exact divide: the approx reciprocal previously broke the 1e-4 tolerance
    # and left rows not summing to 1; the divide is nowhere near the bottleneck.
    out_ref[...] = (e / denom).astype(out_ref.dtype)


def prepare_actor_params(w1, b1, w2, b2):
    """One-time parameter prep (hoisted out of the per-call forward).

    Inputs are in PyTorch nn.Linear layout:
        w1: (32, state_dim), b1: (32,), w2: (action_dim, 32), b2: (action_dim,)
    Returns sublane-padded, kernel-ready parameters.
    """
    hidden, S = w1.shape
    assert hidden == HIDDEN
    A = w2.shape[0]
    S_pad = _round_up(S, SUBLANE)
    A_pad = _round_up(A, SUBLANE)

    w1_p = jnp.zeros((HIDDEN, S_pad), jnp.float32).at[:, :S].set(w1)
    b1_p = jnp.asarray(b1, jnp.float32).reshape(HIDDEN, 1)
    w2_p = jnp.zeros((A_pad, HIDDEN), jnp.float32).at[:A, :].set(w2)
    b2_p = jnp.full((A_pad, 1), NEG_INF, jnp.float32).at[:A, 0].set(
        jnp.asarray(b2, jnp.float32))
    return w1_p, b1_p, w2_p, b2_p


@functools.partial(jax.jit, static_argnames=("action_dim", "tb", "out_dtype"))
def actor_forward(x, w1_p, b1_p, w2_p, b2_p, *, action_dim, tb=8192,
                  out_dtype=jnp.float32):
    """x: (B, state_dim) -> (B, action_dim) softmax probabilities."""
    B, S = x.shape
    S_pad = w1_p.shape[1]
    A_pad = w2_p.shape[0]

    # ---- batch tiling: batch lives in the lane dim -> multiples of 128 -----
    tb = max(LANE, _round_up(tb, LANE))
    B_lane = _round_up(B, LANE)
    TB = min(tb, B_lane)
    # v7x megacore: make sure the "parallel" batch axis has >= 2 grid steps
    # whenever there is enough batch to split (v5e/v6e only pay tiny overhead).
    if (B_lane // TB) < 2 and B_lane >= 2 * LANE:
        TB = _round_up((B_lane + 1) // 2, LANE)
    B_pad = _round_up(B_lane, TB)
    grid = (B_pad // TB,)

    # Transpose to feature-major and pad in one small XLA op (S is tiny, so
    # this costs far less than the old 128-lane-padded output + slice copy).
    x_t = jnp.zeros((S_pad, B_pad), jnp.float32).at[:S, :B].set(x.T)

    out_itemsize = jnp.dtype(out_dtype).itemsize
    cost = pl.CostEstimate(
        flops=2 * B_pad * (S_pad * HIDDEN + HIDDEN * A_pad),
        transcendentals=B_pad * A_pad,  # exp
        bytes_accessed=4 * (S_pad * B_pad + HIDDEN * S_pad + HIDDEN
                            + A_pad * HIDDEN + A_pad)
        + out_itemsize * A_pad * B_pad,
    )

    # Per-step VMEM footprint estimate: double-buffered x/out blocks plus a few
    # (32, TB) f32 temporaries.  Only raise the scoped-VMEM limit if needed
    # (keeps headroom on v7x's 64 MiB physical VMEM).
    est = 4 * TB * (2 * S_pad + 4 * HIDDEN) + out_itemsize * 2 * A_pad * TB
    compiler_kwargs = dict(dimension_semantics=("parallel",))
    if est > (24 << 20):
        compiler_kwargs["vmem_limit_bytes"] = min(int(est) + (16 << 20), 100 << 20)

    out = pl.pallas_call(
        actor_kernel,
        out_shape=jax.ShapeDtypeStruct((A_pad, B_pad), out_dtype),
        grid_spec=pltpu.PrefetchScalarGridSpec(
            num_scalar_prefetch=0,
            grid=grid,
            in_specs=[
                # x_T: one (S_pad, TB) block per grid step (double-buffered).
                pl.BlockSpec((S_pad, TB), lambda i: (0, i)),
                # weights / biases: full-extent, constant index -> loaded once
                # and VMEM-resident across the whole grid.
                pl.BlockSpec((HIDDEN, S_pad), lambda i: (0, 0)),
                pl.BlockSpec((HIDDEN, 1), lambda i: (0, 0)),
                pl.BlockSpec((A_pad, HIDDEN), lambda i: (0, 0)),
                pl.BlockSpec((A_pad, 1), lambda i: (0, 0)),
            ],
            out_specs=pl.BlockSpec((A_pad, TB), lambda i: (0, i)),
        ),
        compiler_params=pltpu.CompilerParams(**compiler_kwargs),
        cost_estimate=cost,
    )(x_t, w1_p, b1_p, w2_p, b2_p)

    # Restore module semantics (B, action_dim).  This reads only A_pad(=8)
    # sublanes per batch lane (32 B/row) vs. the previous 512 B/row layout.
    return out[:action_dim, :B].T


def init_actor_params(key, state_dim, action_dim, hidden=HIDDEN):
    """Deterministic init mirroring nn.Linear default (uniform +/- 1/sqrt(fan_in)),
    in PyTorch (out_features, in_features) layout."""
    k1, k2, k3, k4 = jax.random.split(key, 4)
    bound1 = 1.0 / float(state_dim) ** 0.5
    bound2 = 1.0 / float(hidden) ** 0.5
    w1 = jax.random.uniform(k1, (hidden, state_dim), jnp.float32, -bound1, bound1)
    b1 = jax.random.uniform(k2, (hidden,), jnp.float32, -bound1, bound1)
    w2 = jax.random.uniform(k3, (action_dim, hidden), jnp.float32, -bound2, bound2)
    b2 = jax.random.uniform(k4, (action_dim,), jnp.float32, -bound2, bound2)
    return w1, b1, w2, b2


def _reference(x, w1, b1, w2, b2):
    h = jnp.maximum(x @ w1.T + b1, 0.0)
    return jax.nn.softmax(h @ w2.T + b2, axis=-1)


if __name__ == "__main__":
    # Small shapes consistent with a matrix-game actor: batch=2 states of dim 4,
    # 3 discrete actions, hidden width 32 (fixed by the module).
    batch, state_dim, action_dim = 2, 4, 3

    key = jax.random.PRNGKey(0)
    kx, kp, kx2 = jax.random.split(key, 3)
    x = jax.random.normal(kx, (batch, state_dim), jnp.float32)
    w1, b1, w2, b2 = init_actor_params(kp, state_dim, action_dim)
    w1_p, b1_p, w2_p, b2_p = prepare_actor_params(w1, b1, w2, b2)

    probs = actor_forward(x, w1_p, b1_p, w2_p, b2_p, action_dim=action_dim)
    jax.block_until_ready(probs)

    ref = _reference(x, w1, b1, w2, b2)
    assert probs.shape == (batch, action_dim)
    assert jnp.allclose(probs, ref, atol=1e-4), "mismatch vs reference (small batch)"
    assert jnp.allclose(jnp.sum(probs, axis=-1), 1.0, atol=1e-5)

    # Second check: a batch that is not a multiple of the tile, with a small
    # tile size, to exercise the multi-step grid + padding/slicing path.
    x_big = jax.random.normal(kx2, (300, state_dim), jnp.float32)
    probs_big = actor_forward(x_big, w1_p, b1_p, w2_p, b2_p,
                              action_dim=action_dim, tb=256)
    jax.block_until_ready(probs_big)
    ref_big = _reference(x_big, w1, b1, w2, b2)
    assert probs_big.shape == (300, action_dim)
    assert jnp.allclose(probs_big, ref_big, atol=1e-4), "mismatch vs reference (tiled batch)"
    assert jnp.allclose(jnp.sum(probs_big, axis=-1), 1.0, atol=1e-5)

    print("KERNEL_OK")
</pallas_src>

<mosaic_0001>
module attributes {stable_mosaic.version = 11 : i64} {
  func.func @actor_kernel(%arg0: i32, %arg1: memref<8x128xf32, #tpu.memory_space<vmem>>, %arg2: memref<32x8xf32, #tpu.memory_space<vmem>>, %arg3: memref<32x1xf32, #tpu.memory_space<vmem>>, %arg4: memref<8x32xf32, #tpu.memory_space<vmem>>, %arg5: memref<8x1xf32, #tpu.memory_space<vmem>>, %arg6: memref<8x128xf32, #tpu.memory_space<vmem>>) attributes {dimension_semantics = [#tpu.dimension_semantics<parallel>], iteration_bounds = array<i64: 1>, scalar_prefetch = 0 : i64, scratch_operands = 0 : i64, tpu.core_type = #tpu.core_type<tc>, window_params = [{transform_indices = @transform_0, window_bounds = array<i64: 8, 128>}, {pipeline_mode = #tpu.pipeline_mode<synchronous>, transform_indices = @transform_1, window_bounds = array<i64: 32, 8>}, {pipeline_mode = #tpu.pipeline_mode<synchronous>, transform_indices = @transform_2, window_bounds = array<i64: 32, 1>}, {pipeline_mode = #tpu.pipeline_mode<synchronous>, transform_indices = @transform_3, window_bounds = array<i64: 8, 32>}, {pipeline_mode = #tpu.pipeline_mode<synchronous>, transform_indices = @transform_4, window_bounds = array<i64: 8, 1>}, {transform_indices = @transform_5, window_bounds = array<i64: 8, 128>}]} {
    %c0 = arith.constant 0 : index
    %c0_0 = arith.constant 0 : index
    %0 = vector.load %arg2[%c0, %c0_0] : memref<32x8xf32, #tpu.memory_space<vmem>>, vector<32x8xf32>
    %c0_1 = arith.constant 0 : index
    %c0_2 = arith.constant 0 : index
    %1 = vector.load %arg1[%c0_1, %c0_2] : memref<8x128xf32, #tpu.memory_space<vmem>>, vector<8x128xf32>
    %cst = arith.constant dense<0.000000e+00> : vector<32x128xf32>
    %2 = tpu.matmul %0, %1, %cst {dimension_numbers = #tpu.dot_dimension_numbers<[1], [0], [0], [1], [0, 0, 1, 1], [], []>} : vector<32x8xf32>, vector<8x128xf32>, vector<32x128xf32> -> vector<32x128xf32>
    %c0_3 = arith.constant 0 : index
    %c0_4 = arith.constant 0 : index
    %3 = vector.load %arg3[%c0_3, %c0_4] : memref<32x1xf32, #tpu.memory_space<vmem>>, vector<32x1xf32>
    %4 = vector.broadcast %3 : vector<32x1xf32> to vector<32x128xf32>
    %5 = arith.addf %2, %4 : vector<32x128xf32>
    %cst_5 = arith.constant 0.000000e+00 : f32
    %6 = vector.broadcast %cst_5 : f32 to vector<32x128xf32>
    %7 = arith.maximumf %5, %6 : vector<32x128xf32>
    %c0_6 = arith.constant 0 : index
    %c0_7 = arith.constant 0 : index
    %8 = vector.load %arg4[%c0_6, %c0_7] : memref<8x32xf32, #tpu.memory_space<vmem>>, vector<8x32xf32>
    %cst_8 = arith.constant dense<0.000000e+00> : vector<8x128xf32>
    %9 = tpu.matmul %8, %7, %cst_8 {dimension_numbers = #tpu.dot_dimension_numbers<[1], [0], [0], [1], [0, 0, 1, 1], [], []>} : vector<8x32xf32>, vector<32x128xf32>, vector<8x128xf32> -> vector<8x128xf32>
    %c0_9 = arith.constant 0 : index
    %c0_10 = arith.constant 0 : index
    %10 = vector.load %arg5[%c0_9, %c0_10] : memref<8x1xf32, #tpu.memory_space<vmem>>, vector<8x1xf32>
    %11 = vector.broadcast %10 : vector<8x1xf32> to vector<8x128xf32>
    %12 = arith.addf %9, %11 : vector<8x128xf32>
    %cst_11 = arith.constant dense<0xFF800000> : vector<128xf32>
    %13 = vector.multi_reduction <maximumf>, %12, %cst_11 [0] : vector<8x128xf32> to vector<128xf32>
    %14 = vector.shape_cast %13 : vector<128xf32> to vector<1x128xf32>
    %15 = vector.broadcast %14 : vector<1x128xf32> to vector<8x128xf32>
    %16 = arith.subf %12, %15 : vector<8x128xf32>
    %17 = math.exp %16 : vector<8x128xf32>
    %cst_12 = arith.constant dense<0.000000e+00> : vector<128xf32>
    %18 = vector.multi_reduction <add>, %17, %cst_12 [0] : vector<8x128xf32> to vector<128xf32>
    %19 = vector.shape_cast %18 : vector<128xf32> to vector<1x128xf32>
    %20 = vector.broadcast %19 : vector<1x128xf32> to vector<8x128xf32>
    %21 = arith.divf %17, %20 : vector<8x128xf32>
    %c0_13 = arith.constant 0 : index
    %c0_14 = arith.constant 0 : index
    %22 = vector.load %arg6[%c0_13, %c0_14] : memref<8x128xf32, #tpu.memory_space<vmem>>, vector<8x128xf32>
    tpu.vector_store %arg6[%c0_13, %c0_14], %21 {strides = array<i32>} : memref<8x128xf32, #tpu.memory_space<vmem>>, vector<8x128xf32>,
    return
  }
  func.func @transform_0(%arg0: i32) -> (i32, i32) {
    %c0_i32 = arith.constant 0 : i32
    %c0_i32_0 = arith.constant 0 : i32
    return %c0_i32, %arg0 : i32, i32
  }
  func.func @transform_1(%arg0: i32) -> (i32, i32) {
    %c0_i32 = arith.constant 0 : i32
    %c0_i32_0 = arith.constant 0 : i32
    %c0_i32_1 = arith.constant 0 : i32
    return %c0_i32, %c0_i32_0 : i32, i32
  }
  func.func @transform_2(%arg0: i32) -> (i32, i32) {
    %c0_i32 = arith.constant 0 : i32
    %c0_i32_0 = arith.constant 0 : i32
    %c0_i32_1 = arith.constant 0 : i32
    return %c0_i32, %c0_i32_0 : i32, i32
  }
  func.func @transform_3(%arg0: i32) -> (i32, i32) {
    %c0_i32 = arith.constant 0 : i32
    %c0_i32_0 = arith.constant 0 : i32
    %c0_i32_1 = arith.constant 0 : i32
    return %c0_i32, %c0_i32_0 : i32, i32
  }
  func.func @transform_4(%arg0: i32) -> (i32, i32) {
    %c0_i32 = arith.constant 0 : i32
    %c0_i32_0 = arith.constant 0 : i32
    %c0_i32_1 = arith.constant 0 : i32
    return %c0_i32, %c0_i32_0 : i32, i32
  }
  func.func @transform_5(%arg0: i32) -> (i32, i32) {
    %c0_i32 = arith.constant 0 : i32
    %c0_i32_0 = arith.constant 0 : i32
    return %c0_i32, %arg0 : i32, i32
  }
}

</mosaic_0001>

<bundles_post_ra>
// kernel: actor_forward.1
= control target key start
LH: loop header
LB: loop body
LE: loop exit
PB: predicated region body
PF: predicated region fallthrough
CT: control target
= control target key end

     0   :  { %vm49_vm0 = vcmask 64512   ;;  %v297_v3 = vmov 0   ;;  %v298_v11 = vmov 0.0   ;;  %vm299_vm1 = vmmov 0   ;;  %s370_s0 = inlined_call_operand.vmem [shape: f32[8,128], index: 0, kind: input, shape index: {}]   ;;  %s371_s1 = inlined_call_operand.vmem [shape: f32[32,8], index: 1, kind: input, shape index: {}]   ;;  %s372_s2 = inlined_call_operand.vmem [shape: f32[32,1], index: 2, kind: input, shape index: {}]   ;;  %s373_s4 = inlined_call_operand.vmem [shape: f32[8,1], index: 4, kind: input, shape index: {}]   ;;  %s374_s3 = inlined_call_operand.vmem [shape: f32[8,32], index: 3, kind: input, shape index: {}]   ;;  %s375_s5 = inlined_call_operand.vmem [shape: f32[8,128], index: 5, kind: output, shape index: {}]  }
   0x1   :  { %v24_v0 = vld [vmem:[%s370_s0] sm:$0xff]  ;;  %v21_v2 = vld [vmem:[%s371_s1 + $0x8] sm:$0xff]  ;;  %291 = vset.pattern.permute.xlu0 %v297_v3  ;;  %292 = vset.pattern.permute.xlu1 %v297_v3  ;;  %v22_v4 = vld [vmem:[%s371_s1 + $0x10] sm:$0xff]  ;;  %vm158_vm2 = vcmask 261120  }
   0x2   :  { %v20_v1 = vld [vmem:[%s371_s1] sm:$0xff]  ;;  %269 = vmatprep.subr.mxu0 %v24_v0  ;;  %v28_v5 = vld [vmem:[%s372_s2 + $0x18] sm:$0xff]  ;;  %v26_v6 = vld [vmem:[%s372_s2 + $0x8] sm:$0xff]  ;;  %277 = vmatprep.subr.mxu1 %v298_v11 }
   0x3   :  { %271 = vmatprep.mubr.msk.f32.mxu0 %vm49_vm0, %v20_v1  ;;  %270 = vmatpush3.msra.mxu0 %v24_v0  ;;  %v27_v7 = vld [vmem:[%s372_s2 + $0x10] sm:$0xff]  ;;  %v23_v8 = vld [vmem:[%s371_s1 + $0x18] sm:$0xff]  ;;  %v25_v9 = vld [vmem:[%s372_s2] sm:$0xff] }
   0x4   :  { %46 = vperm.xlu0 %291, %v28_v5   ;;  %272 = vmatmul.mubr.msk.f32.vlgmr.msra.gmra.mxu0 %vm49_vm0, %v21_v2  ;;  %v152_v10 = vld [vmem:[%s373_s4] sm:$0xff] }
   0x5   :  { %36 = vperm.xlu1 %292, %v26_v6   ;;  %274 = vmatprep.mubr.msk.f32.mxu0 %vm49_vm0, %v22_v4  ;;  %v151_v28 = vld [vmem:[%s374_s3] sm:$0xff] }
   0x6   :  { %285 = vmatprep.mubr.msk.f32.mxu1 %vm299_vm1, %v298_v11 }
   0x8   :  { %41 = vperm.xlu0 %291, %v27_v7   ;;  %275 = vmatmul.mubr.msk.f32.gmra.mxu0 %vm49_vm0, %v23_v8 }
   0x9   :  { %31 = vperm.xlu1 %292, %v25_v9  }
   0xc   :  { %155 = vperm.xlu0 %291, %v152_v10  }
  0x7f   :  { %v47_v12 = vpop.permute.xlu0 %46 }
  0x80   :  { %v37_v13 = vpop.permute.xlu1 %36 }
  0x83   :  { %v42_v17 = vpop.permute.xlu0 %41 }
  0x84   :  { %v32_v19 = vpop.permute.xlu1 %31 }
  0x87   :  { %v156_v29 = vpop.permute.xlu0 %155 }
  0xc4   :  { %v273_v14 = vpop.f32.mrf.mxu0 }
  0xc5   :  { %v134_v21 = vadd.f32 %v273_v14, %v37_v13 }
  0xc6   :  { %v128_v15 = vpop.f32.mrf.mxu0 }
  0xc7   :  { %v129_v24 = vadd.f32 %v128_v15, %v32_v19  ;;  %v148_v26 = vmax.f32 %v134_v21, 0.0 }
  0xc8   :  { %v276_v16 = vpop.f32.mrf.mxu0 }
  0xc9   :  { %v144_v18 = vadd.f32 %v276_v16, %v47_v12  ;;  %v147_v27 = vmax.f32 %v129_v24, 0.0 }
  0xca   :  { %v138_v20 = vpop.f32.mrf.mxu0 }
  0xcb   :  { %v150_v22 = vmax.f32 %v144_v18, 0.0  ;;  %v139_v23 = vadd.f32 %v138_v20, %v42_v17 }
  0xcd   :  { %v149_v25 = vmax.f32 %v139_v23, 0.0  ;;  %278 = vmatpush3.msra.mxu1 %v150_v22 }
  0xce   :  { %279 = vmatprep.subr.mxu1 %v298_v11 }
  0xcf   :  { %280 = vmatpush3.msra.mxu1 %v149_v25 }
  0xd0   :  { %281 = vmatprep.subr.mxu1 %v298_v11 }
  0xd1   :  { %282 = vmatpush3.msra.mxu1 %v148_v26 }
  0xd2   :  { %283 = vmatprep.subr.mxu1 %v298_v11 }
  0xd3   :  { %284 = vmatpush3.msra.mxu1 %v147_v27 }
  0xd4   :  { %286 = vmatmul.mubr.msk.f32.vlgmr.msra.gmra.mxu1 %vm158_vm2, %v151_v28 }
 0x194   :  { %v228_v30 = vpop.f32.mrf.mxu1 }
 0x195   :  { %v229_v31 = vadd.f32 %v228_v30, %v156_v29 }
 0x196   :  { %v287_v32 = vpop.f32.mrf.mxu1 }
 0x197   :  { %v232_v33 = vrot.slane %v229_v31, 4 }
 0x199   :  { %v233_v34 = vmax.f32 %v229_v31, %v232_v33 }
 0x19b   :  { %v234_v35 = vrot.slane %v233_v34, 2 }
 0x19d   :  { %v235_v36 = vmax.f32 %v233_v34, %v234_v35 }
 0x19f   :  { %v236_v37 = vrot.slane %v235_v36, 1 }
 0x1a1   :  { %v237_v38 = vmax.f32 %v235_v36, %v236_v37 }
 0x1a3   :  { %v238_v39 = vsub.f32 %v229_v31, %v237_v38 }
 0x1a5   :  { %v239_v40 = vmul.f32 1.442695, %v238_v39 }
 0x1a7   :  { %293 = vpow2.f32 %v239_v40 }
 0x1b4   :  { %v294_v41 = vpop.eup %293 }
 0x1b5   :  { %v241_v42 = vrot.slane %v294_v41, 4 }
 0x1b7   :  { %v242_v43 = vadd.f32 %v294_v41, %v241_v42 }
 0x1b9   :  { %v243_v44 = vrot.slane %v242_v43, 2 }
 0x1bb   :  { %v244_v45 = vadd.f32 %v243_v44, %v242_v43 }
 0x1bd   :  { %v245_v46 = vrot.slane %v244_v45, 1 }
 0x1bf   :  { %v246_v47 = vadd.f32 %v245_v46, %v244_v45 }
 0x1c1   :  { %295 = vrcp.f32 %v246_v47 }
 0x1ce   :  { %v296_v48 = vpop.eup %295 }
 0x1cf   :  { %v248_v49 = vmul.f32 %v296_v48, %v294_v41 }
 0x1d1   :  { %249 = vst [vmem:[%s375_s5] sm:$0xff] %v248_v49 }

</bundles_post_ra>
